<compile_context>
chip_gen: v7x
topology: tpu7x:2x2x1
jax: 0.10.0
libtpu: 0.0.40
codegen_flags: <defaults>
</compile_context>

<pallas_src>
import functools

import jax
import jax.numpy as jnp
from jax.experimental import pallas as pl
from jax.experimental.pallas import tpu as pltpu

LANE = 128      # last-dim (lane) granularity
SUBLANE = 16    # batch padding granularity (bf16-friendly sublane)


def _round_up(n, m):
    return ((n + m - 1) // m) * m


# ---------------------------------------------------------------------------
# Fused kernel: x -> [Linear + ReLU] * (n_linear-1) -> Linear
# refs = (x_ref, w0_ref, b0_ref, w1_ref, b1_ref, ..., o_ref)
#   x_ref : (TM, in_p)  f32   -- per-grid-step batch tile
#   w_ref : (in_p, out_p) bf16 -- resident (constant index_map)
#   b_ref : (1, out_p)  f32   -- resident
# Intermediate activations stay as traced values (vregs/VMEM), never hit HBM.
# ---------------------------------------------------------------------------
def _fused_mlp_kernel(*refs, n_linear: int):
    x_ref = refs[0]
    o_ref = refs[-1]
    h = x_ref[...]                                         # (TM, in_p) f32
    for li in range(n_linear):
        w = refs[1 + 2 * li][...]                          # (in_p, out_p) bf16
        b = refs[2 + 2 * li][...]                          # (1, out_p) f32
        acc = jnp.dot(h.astype(jnp.bfloat16), w,
                      preferred_element_type=jnp.float32)  # f32 accumulate on MXU
        h = acc + b
        if li < n_linear - 1:                              # ReLU on all but last layer
            h = jnp.maximum(h, 0.0)
    o_ref[...] = h.astype(o_ref.dtype)                     # single lane-dense store


def fused_mlp_pallas(x_pad, padded_params, *, tm):
    """Run the whole padded MLP in one pallas_call.

    x_pad:          (Bp, in_p) f32, Bp % tm == 0, in_p % 128 == 0
    padded_params:  list of (w_bf16, b_f32) with w (in_p, out_p) bf16 and
                    b (1, out_p) f32, all feature dims multiples of 128,
                    zero padding outside the real dims.
    tm:             batch tile (grid step) size, multiple of 16.
    """
    Bp, in_p = x_pad.shape
    out_p = padded_params[-1][0].shape[1]
    n_linear = len(padded_params)
    grid = (Bp // tm,)

    flat_args = []
    # Batch tile of x moves with the grid step (pipelined DMA).
    in_specs = [pl.BlockSpec((tm, in_p), lambda i: (i, 0))]
    # Weights / biases: constant index_map -> fetched once, stay VMEM-resident.
    for (w, b) in padded_params:
        flat_args.append(w)
        flat_args.append(b)
        in_specs.append(pl.BlockSpec(w.shape, lambda i: (0, 0)))
        in_specs.append(pl.BlockSpec(b.shape, lambda i: (0, 0)))
    out_specs = pl.BlockSpec((tm, out_p), lambda i: (i, 0))

    # Advisory cost estimate (lets XLA schedule the pad/slice around the call).
    flops = 2 * Bp * sum(int(w.shape[0]) * int(w.shape[1]) for w, _ in padded_params)
    weight_bytes = sum(w.size * 2 + b.size * 4 for w, b in padded_params)
    bytes_accessed = x_pad.size * 4 + Bp * out_p * 4 + weight_bytes
    cost = pl.CostEstimate(flops=flops, transcendentals=0,
                           bytes_accessed=bytes_accessed)

    # Generation-aware VMEM budget: resident weights + double-buffered x/out
    # tiles + headroom, capped well below v7x's 64 MiB physical VMEM.
    act_tile_bytes = tm * in_p * 4 + tm * out_p * 4
    vmem_need = 2 * (weight_bytes + act_tile_bytes) + (4 << 20)
    vmem_limit = int(min(max(vmem_need, 8 << 20), 48 << 20))

    kernel = functools.partial(_fused_mlp_kernel, n_linear=n_linear)
    return pl.pallas_call(
        kernel,
        out_shape=jax.ShapeDtypeStruct((Bp, out_p), jnp.float32),
        grid=grid,
        in_specs=in_specs,
        out_specs=out_specs,
        compiler_params=pltpu.CompilerParams(
            dimension_semantics=("parallel",),
            vmem_limit_bytes=vmem_limit,
        ),
        cost_estimate=cost,
    )(x_pad, *flat_args)


# ---------------------------------------------------------------------------
# Parameter init (PyTorch nn.Linear default: U(-1/sqrt(in_f), 1/sqrt(in_f))),
# stored transposed as (in_f, out_f), then zero-padded ONCE to (128k, 128k);
# weights cast to bf16, biases kept f32 for the epilogue.
# ---------------------------------------------------------------------------
def init_linear(key, in_f, out_f):
    kw, kb = jax.random.split(key)
    bound = 1.0 / jnp.sqrt(jnp.float32(in_f))
    w_t = jax.random.uniform(kw, (in_f, out_f), jnp.float32, -bound, bound)
    b = jax.random.uniform(kb, (out_f,), jnp.float32, -bound, bound)
    return w_t, b


def make_mlp_params(key, in_dim, out_dim, hid_dim, n_layer):
    keys = jax.random.split(key, n_layer + 1)
    params = [init_linear(keys[0], in_dim, hid_dim)]             # fc
    for i in range(n_layer - 1):                                 # hidden linears
        params.append(init_linear(keys[1 + i], hid_dim, hid_dim))
    params.append(init_linear(keys[n_layer], hid_dim, out_dim))  # fc2
    return params


def pad_params(params):
    """Zero-pad each (w_t, b) to lane-aligned shapes; weights -> bf16 (offline)."""
    padded = []
    for w_t, b in params:
        in_f, out_f = w_t.shape
        in_p = _round_up(in_f, LANE)
        out_p = _round_up(out_f, LANE)
        w_pad = jnp.zeros((in_p, out_p), jnp.float32).at[:in_f, :out_f].set(w_t)
        b_pad = jnp.zeros((1, out_p), jnp.float32).at[0, :out_f].set(b)
        padded.append((w_pad.astype(jnp.bfloat16), b_pad))
    return padded


# ---------------------------------------------------------------------------
# Forward: pad x -> fused kernel -> slice back to (batch, out_dim).
# ---------------------------------------------------------------------------
def mlp_forward(padded_params, x, *, out_dim, tm=256):
    B, in_f = x.shape
    tm_eff = min(tm, _round_up(B, SUBLANE))       # batch tile, multiple of 16
    Bp = _round_up(B, tm_eff)                     # padded batch, % tm_eff == 0
    in_p = padded_params[0][0].shape[0]
    x_pad = jnp.zeros((Bp, in_p), jnp.float32).at[:B, :in_f].set(x)
    y_pad = fused_mlp_pallas(x_pad, padded_params, tm=tm_eff)
    return y_pad[:B, :out_dim]


def _reference(params, x):
    """Plain-JAX reference with the same bf16-operand / f32-accumulate math."""
    h = x
    for i, (w_t, b) in enumerate(params):
        h = jnp.dot(h.astype(jnp.bfloat16), w_t.astype(jnp.bfloat16),
                    preferred_element_type=jnp.float32) + b
        if i < len(params) - 1:
            h = jnp.maximum(h, 0.0)
    return h


if __name__ == "__main__":
    in_dim, out_dim, hid_dim, n_layer = 16, 10, 32, 3   # act = 'relu'

    key = jax.random.PRNGKey(0)
    k_params, k_x, k_x2 = jax.random.split(key, 3)
    params = make_mlp_params(k_params, in_dim, out_dim, hid_dim, n_layer)
    padded_params = pad_params(params)

    fwd = jax.jit(functools.partial(mlp_forward, out_dim=out_dim))

    # --- small batch (module-consistent) -----------------------------------
    batch = 2
    x = jax.random.normal(k_x, (batch, in_dim), jnp.float32)
    out = fwd(padded_params, x)
    jax.block_until_ready(out)
    ref = _reference(params, x)
    assert out.shape == (batch, out_dim)
    assert jnp.allclose(out, ref, atol=1e-3, rtol=1e-3), \
        f"max err {jnp.max(jnp.abs(out - ref))}"

    # --- larger ragged batch: exercises the multi-step batch grid + padding --
    batch2 = 300
    x2 = jax.random.normal(k_x2, (batch2, in_dim), jnp.float32)
    out2 = fwd(padded_params, x2)
    jax.block_until_ready(out2)
    ref2 = _reference(params, x2)
    assert out2.shape == (batch2, out_dim)
    assert jnp.allclose(out2, ref2, atol=1e-3, rtol=1e-3), \
        f"max err {jnp.max(jnp.abs(out2 - ref2))}"

    print("KERNEL_OK")
</pallas_src>

<mosaic_0001>
module attributes {stable_mosaic.version = 11 : i64} {
  func.func @_fused_mlp_kernel(%arg0: i32, %arg1: memref<16x128xf32, #tpu.memory_space<vmem>>, %arg2: memref<128x128xbf16, #tpu.memory_space<vmem>>, %arg3: memref<1x128xf32, #tpu.memory_space<vmem>>, %arg4: memref<128x128xbf16, #tpu.memory_space<vmem>>, %arg5: memref<1x128xf32, #tpu.memory_space<vmem>>, %arg6: memref<128x128xbf16, #tpu.memory_space<vmem>>, %arg7: memref<1x128xf32, #tpu.memory_space<vmem>>, %arg8: memref<128x128xbf16, #tpu.memory_space<vmem>>, %arg9: memref<1x128xf32, #tpu.memory_space<vmem>>, %arg10: memref<16x128xf32, #tpu.memory_space<vmem>>) attributes {dimension_semantics = [#tpu.dimension_semantics<parallel>], iteration_bounds = array<i64: 1>, scalar_prefetch = 0 : i64, scratch_operands = 0 : i64, tpu.core_type = #tpu.core_type<tc>, window_params = [{transform_indices = @transform_0, window_bounds = array<i64: 16, 128>}, {pipeline_mode = #tpu.pipeline_mode<synchronous>, transform_indices = @transform_1, window_bounds = array<i64: 128, 128>}, {pipeline_mode = #tpu.pipeline_mode<synchronous>, transform_indices = @transform_2, window_bounds = array<i64: 1, 128>}, {pipeline_mode = #tpu.pipeline_mode<synchronous>, transform_indices = @transform_3, window_bounds = array<i64: 128, 128>}, {pipeline_mode = #tpu.pipeline_mode<synchronous>, transform_indices = @transform_4, window_bounds = array<i64: 1, 128>}, {pipeline_mode = #tpu.pipeline_mode<synchronous>, transform_indices = @transform_5, window_bounds = array<i64: 128, 128>}, {pipeline_mode = #tpu.pipeline_mode<synchronous>, transform_indices = @transform_6, window_bounds = array<i64: 1, 128>}, {pipeline_mode = #tpu.pipeline_mode<synchronous>, transform_indices = @transform_7, window_bounds = array<i64: 128, 128>}, {pipeline_mode = #tpu.pipeline_mode<synchronous>, transform_indices = @transform_8, window_bounds = array<i64: 1, 128>}, {transform_indices = @transform_9, window_bounds = array<i64: 16, 128>}]} {
    %c0 = arith.constant 0 : index
    %c0_0 = arith.constant 0 : index
    %0 = vector.load %arg1[%c0, %c0_0] : memref<16x128xf32, #tpu.memory_space<vmem>>, vector<16x128xf32>
    %c0_1 = arith.constant 0 : index
    %c0_2 = arith.constant 0 : index
    %1 = vector.load %arg2[%c0_1, %c0_2] : memref<128x128xbf16, #tpu.memory_space<vmem>>, vector<128x128xbf16>
    %c0_3 = arith.constant 0 : index
    %c0_4 = arith.constant 0 : index
    %2 = vector.load %arg3[%c0_3, %c0_4] : memref<1x128xf32, #tpu.memory_space<vmem>>, vector<1x128xf32>
    %3 = arith.truncf %0 : vector<16x128xf32> to vector<16x128xbf16>
    %cst = arith.constant dense<0.000000e+00> : vector<16x128xf32>
    %4 = tpu.matmul %3, %1, %cst {dimension_numbers = #tpu.dot_dimension_numbers<[1], [0], [0], [1], [0, 0, 1, 1], [], []>} : vector<16x128xbf16>, vector<128x128xbf16>, vector<16x128xf32> -> vector<16x128xf32>
    %5 = vector.broadcast %2 : vector<1x128xf32> to vector<16x128xf32>
    %6 = arith.addf %4, %5 : vector<16x128xf32>
    %cst_5 = arith.constant 0.000000e+00 : f32
    %7 = vector.broadcast %cst_5 : f32 to vector<16x128xf32>
    %8 = arith.maximumf %6, %7 : vector<16x128xf32>
    %c0_6 = arith.constant 0 : index
    %c0_7 = arith.constant 0 : index
    %9 = vector.load %arg4[%c0_6, %c0_7] : memref<128x128xbf16, #tpu.memory_space<vmem>>, vector<128x128xbf16>
    %c0_8 = arith.constant 0 : index
    %c0_9 = arith.constant 0 : index
    %10 = vector.load %arg5[%c0_8, %c0_9] : memref<1x128xf32, #tpu.memory_space<vmem>>, vector<1x128xf32>
    %11 = arith.truncf %8 : vector<16x128xf32> to vector<16x128xbf16>
    %cst_10 = arith.constant dense<0.000000e+00> : vector<16x128xf32>
    %12 = tpu.matmul %11, %9, %cst_10 {dimension_numbers = #tpu.dot_dimension_numbers<[1], [0], [0], [1], [0, 0, 1, 1], [], []>} : vector<16x128xbf16>, vector<128x128xbf16>, vector<16x128xf32> -> vector<16x128xf32>
    %13 = vector.broadcast %10 : vector<1x128xf32> to vector<16x128xf32>
    %14 = arith.addf %12, %13 : vector<16x128xf32>
    %cst_11 = arith.constant 0.000000e+00 : f32
    %15 = vector.broadcast %cst_11 : f32 to vector<16x128xf32>
    %16 = arith.maximumf %14, %15 : vector<16x128xf32>
    %c0_12 = arith.constant 0 : index
    %c0_13 = arith.constant 0 : index
    %17 = vector.load %arg6[%c0_12, %c0_13] : memref<128x128xbf16, #tpu.memory_space<vmem>>, vector<128x128xbf16>
    %c0_14 = arith.constant 0 : index
    %c0_15 = arith.constant 0 : index
    %18 = vector.load %arg7[%c0_14, %c0_15] : memref<1x128xf32, #tpu.memory_space<vmem>>, vector<1x128xf32>
    %19 = arith.truncf %16 : vector<16x128xf32> to vector<16x128xbf16>
    %cst_16 = arith.constant dense<0.000000e+00> : vector<16x128xf32>
    %20 = tpu.matmul %19, %17, %cst_16 {dimension_numbers = #tpu.dot_dimension_numbers<[1], [0], [0], [1], [0, 0, 1, 1], [], []>} : vector<16x128xbf16>, vector<128x128xbf16>, vector<16x128xf32> -> vector<16x128xf32>
    %21 = vector.broadcast %18 : vector<1x128xf32> to vector<16x128xf32>
    %22 = arith.addf %20, %21 : vector<16x128xf32>
    %cst_17 = arith.constant 0.000000e+00 : f32
    %23 = vector.broadcast %cst_17 : f32 to vector<16x128xf32>
    %24 = arith.maximumf %22, %23 : vector<16x128xf32>
    %c0_18 = arith.constant 0 : index
    %c0_19 = arith.constant 0 : index
    %25 = vector.load %arg8[%c0_18, %c0_19] : memref<128x128xbf16, #tpu.memory_space<vmem>>, vector<128x128xbf16>
    %c0_20 = arith.constant 0 : index
    %c0_21 = arith.constant 0 : index
    %26 = vector.load %arg9[%c0_20, %c0_21] : memref<1x128xf32, #tpu.memory_space<vmem>>, vector<1x128xf32>
    %27 = arith.truncf %24 : vector<16x128xf32> to vector<16x128xbf16>
    %cst_22 = arith.constant dense<0.000000e+00> : vector<16x128xf32>
    %28 = tpu.matmul %27, %25, %cst_22 {dimension_numbers = #tpu.dot_dimension_numbers<[1], [0], [0], [1], [0, 0, 1, 1], [], []>} : vector<16x128xbf16>, vector<128x128xbf16>, vector<16x128xf32> -> vector<16x128xf32>
    %29 = vector.broadcast %26 : vector<1x128xf32> to vector<16x128xf32>
    %30 = arith.addf %28, %29 : vector<16x128xf32>
    %c0_23 = arith.constant 0 : index
    %c0_24 = arith.constant 0 : index
    %31 = vector.load %arg10[%c0_23, %c0_24] : memref<16x128xf32, #tpu.memory_space<vmem>>, vector<16x128xf32>
    tpu.vector_store %arg10[%c0_23, %c0_24], %30 {strides = array<i32>} : memref<16x128xf32, #tpu.memory_space<vmem>>, vector<16x128xf32>,
    return
  }
  func.func @transform_0(%arg0: i32) -> (i32, i32) {
    %c0_i32 = arith.constant 0 : i32
    %c0_i32_0 = arith.constant 0 : i32
    return %arg0, %c0_i32 : i32, i32
  }
  func.func @transform_1(%arg0: i32) -> (i32, i32) {
    %c0_i32 = arith.constant 0 : i32
    %c0_i32_0 = arith.constant 0 : i32
    %c0_i32_1 = arith.constant 0 : i32
    return %c0_i32, %c0_i32_0 : i32, i32
  }
  func.func @transform_2(%arg0: i32) -> (i32, i32) {
    %c0_i32 = arith.constant 0 : i32
    %c0_i32_0 = arith.constant 0 : i32
    %c0_i32_1 = arith.constant 0 : i32
    return %c0_i32, %c0_i32_0 : i32, i32
  }
  func.func @transform_3(%arg0: i32) -> (i32, i32) {
    %c0_i32 = arith.constant 0 : i32
    %c0_i32_0 = arith.constant 0 : i32
    %c0_i32_1 = arith.constant 0 : i32
    return %c0_i32, %c0_i32_0 : i32, i32
  }
  func.func @transform_4(%arg0: i32) -> (i32, i32) {
    %c0_i32 = arith.constant 0 : i32
    %c0_i32_0 = arith.constant 0 : i32
    %c0_i32_1 = arith.constant 0 : i32
    return %c0_i32, %c0_i32_0 : i32, i32
  }
  func.func @transform_5(%arg0: i32) -> (i32, i32) {
    %c0_i32 = arith.constant 0 : i32
    %c0_i32_0 = arith.constant 0 : i32
    %c0_i32_1 = arith.constant 0 : i32
    return %c0_i32, %c0_i32_0 : i32, i32
  }
  func.func @transform_6(%arg0: i32) -> (i32, i32) {
    %c0_i32 = arith.constant 0 : i32
    %c0_i32_0 = arith.constant 0 : i32
    %c0_i32_1 = arith.constant 0 : i32
    return %c0_i32, %c0_i32_0 : i32, i32
  }
  func.func @transform_7(%arg0: i32) -> (i32, i32) {
    %c0_i32 = arith.constant 0 : i32
    %c0_i32_0 = arith.constant 0 : i32
    %c0_i32_1 = arith.constant 0 : i32
    return %c0_i32, %c0_i32_0 : i32, i32
  }
  func.func @transform_8(%arg0: i32) -> (i32, i32) {
    %c0_i32 = arith.constant 0 : i32
    %c0_i32_0 = arith.constant 0 : i32
    %c0_i32_1 = arith.constant 0 : i32
    return %c0_i32, %c0_i32_0 : i32, i32
  }
  func.func @transform_9(%arg0: i32) -> (i32, i32) {
    %c0_i32 = arith.constant 0 : i32
    %c0_i32_0 = arith.constant 0 : i32
    return %arg0, %c0_i32 : i32, i32
  }
}

</mosaic_0001>

<bundles_post_ra>
// kernel: mlp_forward.1
= control target key start
LH: loop header
LB: loop body
LE: loop exit
PB: predicated region body
PF: predicated region fallthrough
CT: control target
= control target key end

     0   :  { %14 = vsyncpa [#allocation3], 0  ;;  %s1039_s0 = inlined_call_operand.vmem [shape: f32[16,128], index: 0, kind: input, shape index: {}]   ;;  %s1040_s1 = inlined_call_operand.hbm [shape: bf16[128,128], index: 1, kind: input, shape index: {}]   ;;  %s1041_s2 = inlined_call_operand.vmem [shape: f32[1,128], index: 2, kind: input, shape index: {}]   ;;  %s1042_s3 = inlined_call_operand.hbm [shape: bf16[128,128], index: 3, kind: input, shape index: {}]   ;;  %s1043_s4 = inlined_call_operand.vmem [shape: f32[1,128], index: 4, kind: input, shape index: {}]   ;;  %s1044_s5 = inlined_call_operand.hbm [shape: bf16[128,128], index: 5, kind: input, shape index: {}]   ;;  %s1045_s6 = inlined_call_operand.vmem [shape: f32[1,128], index: 6, kind: input, shape index: {}]   ;;  %s1046_s7 = inlined_call_operand.hbm [shape: bf16[128,128], index: 7, kind: input, shape index: {}]   ;;  %s1047_s8 = inlined_call_operand.vmem [shape: f32[1,128], index: 8, kind: input, shape index: {}]   ;;  %s1048_s9 = inlined_call_operand.vmem [shape: f32[16,128], index: 9, kind: output, shape index: {}]  }
   0x1   :  { %15 = vsyncpa [#allocation5], 0 }
   0x2   :  { %16 = vsyncpa [#allocation8], 0  ;;  %s843_s30 = smov [#allocation4]   ;;  %s844_s11 = smov [#allocation2]  }
   0x3   :  { %s38_s10 = sshll.u32 %s843_s30, 4  ;;  %s24_s12 = sshll.u32 %s844_s11, 4  ;;  %s39_s10 = int_to_ptr.vmem [resolvable:$true] %s38_s10  ;;  %s901_s12 = int_to_ptr.vmem [resolvable:$true] %s24_s12 }
   0x4   :  { %s749_s15 = scalar_lea.hbm %s1042_s3, 1024 }
   0x5   :  { %p750_p0 = scmp.ne.s32.totalorder %s1042_s3, %s749_s15  ;;  %p753_p1 = scmp.lt.u32.totalorder %s749_s15, %s1042_s3 }
   0x7   :  { %p755_p2 = pnand %p753_p1, %p750_p0 }
   0x9   :  { %758 = shalt.err (!%p755_p2)
}
   0xa   :  { %s759_s20 = scalar_lea.vmem %s39_s10, 1024  ;;  %p764_p4 = scmp.lt.s32.totalorder %s39_s10, %s39_s10 }
   0xb   :  { %p760_p3 = scmp.ne.s32.totalorder %s39_s10, %s759_s20  ;;  %p765_p5 = scmp.lt.s32.totalorder %s759_s20, %s759_s20 }
   0xd   :  { %p766_p6 = por %p765_p5, %p764_p4 }
   0xf   :  { %p767_p7 = pnand %p766_p6, %p760_p3 }
  0x11   :  { %770 = shalt.err (!%p767_p7)
}
  0x12   :  { %s845_s21 = smov 64   ;;  %s846_s22 = smov 4  }
  0x13   :  { %44 = dma.hbm_to_vmem [thread:$0]  %s1042_s3, 1024, %s39_s10, [#allocation5], %s845_s21, %s845_s21, %s846_s22  }
  0x14   :  { %s771_s27 = scalar_lea.hbm %s1040_s1, 1024 }
  0x15   :  { %p772_p8 = scmp.ne.s32.totalorder %s1040_s1, %s771_s27  ;;  %p775_p9 = scmp.lt.u32.totalorder %s771_s27, %s1040_s1 }
  0x17   :  { %p777_p10 = pnand %p775_p9, %p772_p8 }
  0x19   :  { %780 = shalt.err (!%p777_p10)
}
  0x1a   :  { %s781_s13 = scalar_lea.vmem %s901_s12, 1024  ;;  %p786_p12 = scmp.lt.s32.totalorder %s901_s12, %s901_s12 }
  0x1b   :  { %p782_p11 = scmp.ne.s32.totalorder %s901_s12, %s781_s13  ;;  %p787_p13 = scmp.lt.s32.totalorder %s781_s13, %s781_s13 }
  0x1d   :  { %p788_p0 = por %p787_p13, %p786_p12 }
  0x1f   :  { %p789_p1 = pnand %p788_p0, %p782_p11 }
  0x21   :  { %792 = shalt.err (!%p789_p1)
}
  0x22   :  { %30 = dma.hbm_to_vmem [thread:$0]  %s1040_s1, 1024, %s901_s12, [#allocation3], %s845_s21, %s845_s21, %s846_s22  }
  0x23   :  { %s847_s14 = smov [#allocation6]   ;;  %s848_s16 = smov [#allocation7]  }
  0x24   :  { %s52_s15 = sshll.u32 %s847_s14, 4  ;;  %s66_s17 = sshll.u32 %s848_s16, 4  ;;  %s53_s15 = int_to_ptr.vmem [resolvable:$true] %s52_s15  ;;  %s938_s17 = int_to_ptr.vmem [resolvable:$true] %s66_s17 }
  0x25   :  { %s793_s20 = scalar_lea.hbm %s1044_s5, 1024 }
  0x26   :  { %p794_p2 = scmp.ne.s32.totalorder %s1044_s5, %s793_s20  ;;  %p797_p3 = scmp.lt.u32.totalorder %s793_s20, %s1044_s5 }
  0x28   :  { %p799_p4 = pnand %p797_p3, %p794_p2 }
  0x2a   :  { %802 = shalt.err (!%p799_p4)
}
  0x2b   :  { %s803_s1 = scalar_lea.vmem %s53_s15, 1024  ;;  %p808_p6 = scmp.lt.s32.totalorder %s53_s15, %s53_s15 }
  0x2c   :  { %p804_p5 = scmp.ne.s32.totalorder %s53_s15, %s803_s1  ;;  %p809_p7 = scmp.lt.s32.totalorder %s803_s1, %s803_s1 }
  0x2e   :  { %p810_p8 = por %p809_p7, %p808_p6 }
  0x30   :  { %p811_p9 = pnand %p810_p8, %p804_p5 }
  0x32   :  { %814 = shalt.err (!%p811_p9)
}
  0x33   :  { %58 = dma.hbm_to_vmem [thread:$0]  %s1044_s5, 1024, %s53_s15, [#allocation5], %s845_s21, %s845_s21, %s846_s22  }
  0x34   :  { %s815_s30 = scalar_lea.hbm %s1046_s7, 1024 }
  0x35   :  { %p816_p10 = scmp.ne.s32.totalorder %s1046_s7, %s815_s30  ;;  %p819_p11 = scmp.lt.u32.totalorder %s815_s30, %s1046_s7 }
  0x37   :  { %p821_p12 = pnand %p819_p11, %p816_p10 }
  0x39   :  { %824 = shalt.err (!%p821_p12)
}
  0x3a   :  { %s825_s14 = scalar_lea.vmem %s938_s17, 1024  ;;  %p830_p0 = scmp.lt.s32.totalorder %s938_s17, %s938_s17 }
  0x3b   :  { %p826_p13 = scmp.ne.s32.totalorder %s938_s17, %s825_s14  ;;  %p831_p1 = scmp.lt.s32.totalorder %s825_s14, %s825_s14 }
  0x3d   :  { %p832_p2 = por %p831_p1, %p830_p0 }
  0x3f   :  { %p833_p3 = pnand %p832_p2, %p826_p13 }
  0x41   :  { %836 = shalt.err (!%p833_p3)
}
  0x42   :  { %72 = dma.hbm_to_vmem [thread:$0]  %s1046_s7, 1024, %s938_s17, [#allocation8], %s845_s21, %s845_s21, %s846_s22  }
  0x43   :  { %837 = dma.done.wait [#allocation3], 1024  }
  0x44   :  { %838 = vsyncadd [#allocation3], 4294966272 }
  0x45   :  { %839 = dma.done.wait [#allocation5], 2048  }
  0x46   :  { %840 = vsyncadd [#allocation5], 4294965248 }
  0x47   :  { %841 = dma.done.wait [#allocation8], 1024  }
  0x48   :  { %842 = vsyncadd [#allocation8], 4294966272  ;;  %v849_v0 = vmov 0.0   ;;  %vm850_vm0 = vmmov 0   ;;  %v717_v1 = vld [vmem:[#allocation2] sm:$0xff]   ;;  %v718_v2 = vld [vmem:[#allocation2 + $0x8] sm:$0xff]  }
  0x49   :  { %629 = vmatprep.subr.bf16.mxu0 %v849_v0  ;;  %645 = vmatprep.mubr.msk.bf16.mxu0 %vm850_vm0, %v849_v0  ;;  %v719_v3 = vld [vmem:[#allocation2 + $0x10] sm:$0xff]   ;;  %v725_v4 = vld [vmem:[#allocation4] sm:$0xff]   ;;  %v720_v5 = vld [vmem:[#allocation2 + $0x18] sm:$0xff]  }
  0x4a   :  { %649 = vmatprep.subr.bf16.mxu1 %v849_v0  ;;  %665 = vmatprep.mubr.msk.bf16.mxu1 %vm850_vm0, %v849_v0  ;;  %v726_v6 = vld [vmem:[#allocation4 + $0x8] sm:$0xff]   ;;  %v721_v7 = vld [vmem:[#allocation2 + $0x20] sm:$0xff]   ;;  %v727_v8 = vld [vmem:[#allocation4 + $0x10] sm:$0xff]  }
  0x4b   :  { %630 = vmatpush3.bf16.msra.mxu0 %v717_v1  ;;  %650 = vmatpush3.bf16.msra.mxu1 %v725_v4  ;;  %v722_v9 = vld [vmem:[#allocation2 + $0x28] sm:$0xff]   ;;  %v728_v10 = vld [vmem:[#allocation4 + $0x18] sm:$0xff]   ;;  %v723_v11 = vld [vmem:[#allocation2 + $0x30] sm:$0xff]  }
  0x4c   :  { %631 = vmatprep.subr.bf16.mxu0 %v849_v0  ;;  %651 = vmatprep.subr.bf16.mxu1 %v849_v0  ;;  %v729_v12 = vld [vmem:[#allocation4 + $0x20] sm:$0xff]   ;;  %v724_v13 = vld [vmem:[#allocation2 + $0x38] sm:$0xff]   ;;  %v89_v15 = vld [vmem:[%s1039_s0 + $0x8] sm:$0xff] }
  0x4d   :  { %v88_v14 = vld [vmem:[%s1039_s0] sm:$0xff]  ;;  %v730_v16 = vld [vmem:[#allocation4 + $0x28] sm:$0xff]   ;;  %v731_v18 = vld [vmem:[#allocation4 + $0x30] sm:$0xff]  }
  0x4e   :  { %v107_v17 = vpack.c.bf16 %v89_v15, %v88_v14  ;;  %v732_v19 = vld [vmem:[#allocation4 + $0x38] sm:$0xff]   ;;  %v733_v20 = vld [vmem:[#allocation6] sm:$0xff]   ;;  %v734_v21 = vld [vmem:[#allocation6 + $0x8] sm:$0xff]  }
  0x4f   :  { %632 = vmatpush3.bf16.msra.mxu0 %v718_v2  ;;  %652 = vmatpush3.bf16.msra.mxu1 %v726_v6  ;;  %v735_v22 = vld [vmem:[#allocation6 + $0x10] sm:$0xff]   ;;  %v736_v23 = vld [vmem:[#allocation6 + $0x18] sm:$0xff]   ;;  %v737_v24 = vld [vmem:[#allocation6 + $0x20] sm:$0xff]  }
  0x50   :  { %633 = vmatprep.subr.bf16.mxu0 %v849_v0  ;;  %653 = vmatprep.subr.bf16.mxu1 %v849_v0  ;;  %v738_v25 = vld [vmem:[#allocation6 + $0x28] sm:$0xff]   ;;  %v557_v26 = vld [vmem:[%s1041_s2] ss:$0 sm:$0xff]  ;;  %v739_v36 = vld [vmem:[#allocation6 + $0x30] sm:$0xff]  }
  0x51   :  { %v740_v37 = vld [vmem:[#allocation6 + $0x38] sm:$0xff]   ;;  %v741_v38 = vld [vmem:[#allocation7] sm:$0xff]   ;;  %v742_v39 = vld [vmem:[#allocation7 + $0x8] sm:$0xff]  }
  0x52   :  { %v743_v40 = vld [vmem:[#allocation7 + $0x10] sm:$0xff]   ;;  %v744_v41 = vld [vmem:[#allocation7 + $0x18] sm:$0xff]   ;;  %v745_v42 = vld [vmem:[#allocation7 + $0x20] sm:$0xff]  }
  0x53   :  { %634 = vmatpush3.bf16.msra.mxu0 %v719_v3  ;;  %654 = vmatpush3.bf16.msra.mxu1 %v727_v8  ;;  %v746_v43 = vld [vmem:[#allocation7 + $0x28] sm:$0xff]   ;;  %v566_v44 = vld [vmem:[%s1043_s4] ss:$0 sm:$0xff]  ;;  %v747_v54 = vld [vmem:[#allocation7 + $0x30] sm:$0xff]  }
  0x54   :  { %635 = vmatprep.subr.bf16.mxu0 %v849_v0  ;;  %655 = vmatprep.subr.bf16.mxu1 %v849_v0  ;;  %v748_v55 = vld [vmem:[#allocation7 + $0x38] sm:$0xff]   ;;  %v575_v56 = vld [vmem:[%s1045_s6] ss:$0 sm:$0xff] }
  0x57   :  { %636 = vmatpush3.bf16.msra.mxu0 %v720_v5  ;;  %656 = vmatpush3.bf16.msra.mxu1 %v728_v10 }
  0x58   :  { %637 = vmatprep.subr.bf16.mxu0 %v849_v0  ;;  %657 = vmatprep.subr.bf16.mxu1 %v849_v0 }
  0x5b   :  { %638 = vmatpush3.bf16.msra.mxu0 %v721_v7  ;;  %658 = vmatpush3.bf16.msra.mxu1 %v729_v12 }
  0x5c   :  { %639 = vmatprep.subr.bf16.mxu0 %v849_v0  ;;  %659 = vmatprep.subr.bf16.mxu1 %v849_v0 }
  0x5f   :  { %640 = vmatpush3.bf16.msra.mxu0 %v722_v9  ;;  %660 = vmatpush3.bf16.msra.mxu1 %v730_v16 }
  0x60   :  { %641 = vmatprep.subr.bf16.mxu0 %v849_v0  ;;  %661 = vmatprep.subr.bf16.mxu1 %v849_v0 }
  0x63   :  { %642 = vmatpush3.bf16.msra.mxu0 %v723_v11  ;;  %662 = vmatpush3.bf16.msra.mxu1 %v731_v18 }
  0x64   :  { %643 = vmatprep.subr.bf16.mxu0 %v849_v0  ;;  %663 = vmatprep.subr.bf16.mxu1 %v849_v0 }
  0x67   :  { %644 = vmatpush3.bf16.msra.mxu0 %v724_v13  ;;  %664 = vmatpush3.bf16.msra.mxu1 %v732_v19 }
  0x68   :  { %669 = vmatprep.subr.bf16.mxu0 %v849_v0  ;;  %689 = vmatprep.subr.bf16.mxu1 %v849_v0 }
  0x6a   :  { %646 = vmatmul.mubr.bf16.vlgmr.msra.gmra.mrb[0].mxu0 %v107_v17 }
  0x6b   :  { %685 = vmatprep.mubr.msk.bf16.mxu0 %vm850_vm0, %v849_v0  ;;  %670 = vmatpush3.bf16.msra.mxu0 %v733_v20 }
  0x6c   :  { %671 = vmatprep.subr.bf16.mxu0 %v849_v0 }
  0x6f   :  { %672 = vmatpush3.bf16.msra.mxu0 %v734_v21 }
  0x70   :  { %673 = vmatprep.subr.bf16.mxu0 %v849_v0 }
  0x73   :  { %674 = vmatpush3.bf16.msra.mxu0 %v735_v22 }
  0x74   :  { %675 = vmatprep.subr.bf16.mxu0 %v849_v0 }
  0x77   :  { %676 = vmatpush3.bf16.msra.mxu0 %v736_v23 }
  0x78   :  { %677 = vmatprep.subr.bf16.mxu0 %v849_v0 }
  0x7b   :  { %678 = vmatpush3.bf16.msra.mxu0 %v737_v24 }
  0x7c   :  { %679 = vmatprep.subr.bf16.mxu0 %v849_v0 }
  0x7f   :  { %680 = vmatpush3.bf16.msra.mxu0 %v738_v25 }
  0x80   :  { %681 = vmatprep.subr.bf16.mxu0 %v849_v0 }
  0x83   :  { %682 = vmatpush3.bf16.msra.mxu0 %v739_v36 }
  0x84   :  { %683 = vmatprep.subr.bf16.mxu0 %v849_v0 }
  0x87   :  { %684 = vmatpush3.bf16.msra.mxu0 %v740_v37 }
 0x13d   :  { %v196_v27 = vpop.f32.mrb[0].mxu0 }
 0x13e   :  { %v197_v28 = vadd.f32 %v557_v26, %v196_v27  ;;  %v647_v29 = vpop.f32.mrb[1].mxu0 }
 0x13f   :  { %v199_v30 = vpop.f32.mrb[2].mxu0 }
 0x140   :  { %v200_v31 = vadd.f32 %v557_v26, %v199_v30  ;;  %v648_v32 = vpop.f32.mrb[3].mxu0  ;;  %v203_v33 = vmax.f32 %v197_v28, 0.0 }
 0x142   :  { %v204_v34 = vmax.f32 %v200_v31, 0.0 }
 0x144   :  { %v222_v35 = vpack.c.bf16 %v204_v34, %v203_v33 }
 0x146   :  { %666 = vmatmul.mubr.bf16.vlgmr.msra.gmra.mrb[0].mxu1 %v222_v35 }
 0x147   :  { %705 = vmatprep.mubr.msk.bf16.mxu1 %vm850_vm0, %v849_v0  ;;  %690 = vmatpush3.bf16.msra.mxu1 %v741_v38 }
 0x148   :  { %691 = vmatprep.subr.bf16.mxu1 %v849_v0 }
 0x14b   :  { %692 = vmatpush3.bf16.msra.mxu1 %v742_v39 }
 0x14c   :  { %693 = vmatprep.subr.bf16.mxu1 %v849_v0 }
 0x14f   :  { %694 = vmatpush3.bf16.msra.mxu1 %v743_v40 }
 0x150   :  { %695 = vmatprep.subr.bf16.mxu1 %v849_v0 }
 0x153   :  { %696 = vmatpush3.bf16.msra.mxu1 %v744_v41 }
 0x154   :  { %697 = vmatprep.subr.bf16.mxu1 %v849_v0 }
 0x157   :  { %698 = vmatpush3.bf16.msra.mxu1 %v745_v42 }
 0x158   :  { %699 = vmatprep.subr.bf16.mxu1 %v849_v0 }
 0x15b   :  { %700 = vmatpush3.bf16.msra.mxu1 %v746_v43 }
 0x15c   :  { %701 = vmatprep.subr.bf16.mxu1 %v849_v0 }
 0x15f   :  { %702 = vmatpush3.bf16.msra.mxu1 %v747_v54 }
 0x160   :  { %703 = vmatprep.subr.bf16.mxu1 %v849_v0  ;;  %v584_v0 = vld [vmem:[%s1047_s8] ss:$0 sm:$0xff] }
 0x163   :  { %704 = vmatpush3.bf16.msra.mxu1 %v748_v55 }
 0x219   :  { %v311_v45 = vpop.f32.mrb[0].mxu1 }
 0x21a   :  { %v312_v46 = vadd.f32 %v566_v44, %v311_v45  ;;  %v667_v47 = vpop.f32.mrb[1].mxu1 }
 0x21b   :  { %v314_v48 = vpop.f32.mrb[2].mxu1 }
 0x21c   :  { %v315_v49 = vadd.f32 %v566_v44, %v314_v48  ;;  %v668_v50 = vpop.f32.mrb[3].mxu1  ;;  %v318_v51 = vmax.f32 %v312_v46, 0.0 }
 0x21e   :  { %v319_v52 = vmax.f32 %v315_v49, 0.0 }
 0x220   :  { %v337_v53 = vpack.c.bf16 %v319_v52, %v318_v51 }
 0x222   :  { %686 = vmatmul.mubr.bf16.vlgmr.msra.gmra.mrb[4].mxu0 %v337_v53 }
 0x2f5   :  { %v426_v57 = vpop.f32.mrb[4].mxu0 }
 0x2f6   :  { %v427_v58 = vadd.f32 %v575_v56, %v426_v57  ;;  %v687_v59 = vpop.f32.mrb[5].mxu0 }
 0x2f7   :  { %v429_v60 = vpop.f32.mrb[6].mxu0 }
 0x2f8   :  { %v430_v61 = vadd.f32 %v575_v56, %v429_v60  ;;  %v688_v62 = vpop.f32.mrb[7].mxu0  ;;  %v433_v63 = vmax.f32 %v427_v58, 0.0 }
 0x2fa   :  { %v434_v1 = vmax.f32 %v430_v61, 0.0 }
 0x2fc   :  { %v452_v2 = vpack.c.bf16 %v434_v1, %v433_v63 }
 0x2fe   :  { %706 = vmatmul.mubr.bf16.vlgmr.msra.gmra.mrb[4].mxu1 %v452_v2 }
 0x3d1   :  { %v541_v3 = vpop.f32.mrb[4].mxu1 }
 0x3d2   :  { %v542_v4 = vadd.f32 %v584_v0, %v541_v3  ;;  %v707_v5 = vpop.f32.mrb[5].mxu1 }
 0x3d3   :  { %v544_v6 = vpop.f32.mrb[6].mxu1 }
 0x3d4   :  { %548 = vst [vmem:[%s1048_s9] sm:$0xff] %v542_v4  ;;  %v545_v7 = vadd.f32 %v584_v0, %v544_v6  ;;  %v708_v8 = vpop.f32.mrb[7].mxu1 }
 0x3d6   :  { %549 = vst [vmem:[%s1048_s9 + $0x8] sm:$0xff] %v545_v7 }
 0x3d7   :  { %554 = vsyncpa [#allocation3], 1 }
 0x3d8   :  { %555 = vsyncpa [#allocation5], 1 }
 0x3d9   :  { %556 = vsyncpa [#allocation8], 1 }

</bundles_post_ra>
